<compile_context>
chip_gen: v7x
topology: tpu7x:2x2x1
jax: 0.10.0
libtpu: 0.0.40
codegen_flags: <defaults>
</compile_context>

<pallas_src>
import jax
import jax.numpy as jnp
from jax import lax
from jax.experimental import pallas as pl
from jax.experimental.pallas import tpu as pltpu


def _index_select_kernel(y_smem, x_ref, out0_ref, out1_ref, out2_ref):
    D0, D1, D2 = x_ref.shape
    K = out0_ref.shape[0]

    # ---- out0 = x[y, :, :] : dynamic-slice copies along the untiled leading dim.
    for k in range(K):                                   # K is tiny (=4); static unroll is fine
        idx0 = jnp.clip(y_smem[k], 0, D0 - 1)            # guard against OOB VMEM reads
        out0_ref[pl.ds(k, 1)] = x_ref[pl.ds(idx0, 1)]

    # ---- out1 = x[:, y, :] : sublane dynamic-slice copies over the full D0 range.
    #      (Replaces the old one-hot matmul path: just a few vld/vst bundles.)
    for k in range(K):
        idx1 = jnp.clip(y_smem[k], 0, D1 - 1)
        out1_ref[:, pl.ds(k, 1), :] = x_ref[:, pl.ds(idx1, 1), :]

    # ---- out2 = x[:, :, y] : lane gather as ONE fused one-hot matmul.
    # Build the (1, K) index row in-kernel from the SMEM scalars (no extra
    # VMEM inputs / DMAs needed).
    col = lax.broadcasted_iota(jnp.int32, (1, K), 1)
    y_row = jnp.zeros((1, K), jnp.int32)
    for k in range(K):
        y_row = jnp.where(col == k, y_smem[k], y_row)
    # One-hot (D2, K); out-of-range indices produce an all-zero column (clamped
    # semantics are documented above — valid indices match torch exactly).
    oh2 = (lax.broadcasted_iota(jnp.int32, (D2, K), 0) == y_row).astype(x_ref.dtype)

    # Leading-dim merge (D0, D1, D2) -> (D0*D1, D2) is layout-free (the
    # (sublane, lane) tile is preserved), so a single (128,128)@(128,K) matmul
    # covers all of out2.  Float inputs only (module's spec uses f32).
    x2d = x_ref[...].reshape(D0 * D1, D2)
    out2 = jnp.dot(x2d, oh2, preferred_element_type=jnp.float32)
    out2_ref[...] = out2.reshape(D0, D1, K).astype(out2_ref.dtype)


def index_select_all(x, y):
    """Returns (index_select(x,0,y), index_select(x,1,y), index_select(x,2,y))."""
    D0, D1, D2 = x.shape
    K = y.shape[0]
    y = y.astype(jnp.int32)   # torch uses int64; values identical for valid indices

    out_shape = (
        jax.ShapeDtypeStruct((K, D1, D2), x.dtype),
        jax.ShapeDtypeStruct((D0, K, D2), x.dtype),
        jax.ShapeDtypeStruct((D0, D1, K), x.dtype),
    )

    # Single-step grid: problem is fixed-overhead bound at these shapes.
    # TODO(synk): for larger D0 on v7x, split D0 over a "parallel" grid axis to
    # use the second TensorCore.
    grid_spec = pltpu.PrefetchScalarGridSpec(
        num_scalar_prefetch=1,          # y lands in SMEM, passed first to the kernel
        grid=(1,),
        in_specs=[
            pl.BlockSpec((D0, D1, D2), lambda i, yref: (0, 0, 0)),   # x (full block)
        ],
        out_specs=[
            pl.BlockSpec((K, D1, D2), lambda i, yref: (0, 0, 0)),
            pl.BlockSpec((D0, K, D2), lambda i, yref: (0, 0, 0)),
            pl.BlockSpec((D0, D1, K), lambda i, yref: (0, 0, 0)),
        ],
    )

    return pl.pallas_call(
        _index_select_kernel,
        out_shape=out_shape,
        grid_spec=grid_spec,
        compiler_params=pltpu.CompilerParams(
            dimension_semantics=("arbitrary",)),
    )(y, x)


if __name__ == "__main__":
    key = jax.random.PRNGKey(0)
    D0, D1, D2, K = 8, 16, 128, 4
    x = jax.random.normal(key, (D0, D1, D2), dtype=jnp.float32)
    y = jnp.array([1, 0, 5, 3], dtype=jnp.int32)   # valid for all three dims

    out0, out1, out2 = jax.block_until_ready(index_select_all(x, y))

    # Reference (plain JAX) for verification.
    ref0 = jnp.take(x, y, axis=0)
    ref1 = jnp.take(x, y, axis=1)
    ref2 = jnp.take(x, y, axis=2)

    assert out0.shape == (K, D1, D2) and out0.dtype == x.dtype
    assert out1.shape == (D0, K, D2) and out1.dtype == x.dtype
    assert out2.shape == (D0, D1, K) and out2.dtype == x.dtype
    assert jnp.allclose(out0, ref0)
    assert jnp.allclose(out1, ref1)
    assert jnp.allclose(out2, ref2)

    print("KERNEL_OK")
</pallas_src>

<mosaic_0001>
module attributes {stable_mosaic.version = 11 : i64} {
  func.func @_index_select_kernel(%arg0: i32, %arg1: memref<4xi32, #tpu.memory_space<smem>>, %arg2: memref<8x16x128xf32, #tpu.memory_space<vmem>>, %arg3: memref<4x16x128xf32, #tpu.memory_space<vmem>>, %arg4: memref<8x4x128xf32, #tpu.memory_space<vmem>>, %arg5: memref<8x16x4xf32, #tpu.memory_space<vmem>>) attributes {dimension_semantics = [#tpu.dimension_semantics<arbitrary>], iteration_bounds = array<i64: 1>, scalar_prefetch = 1 : i64, scratch_operands = 0 : i64, tpu.core_type = #tpu.core_type<tc>, window_params = [{pipeline_mode = #tpu.pipeline_mode<synchronous>, transform_indices = @transform_0, window_bounds = array<i64: 8, 16, 128>}, {pipeline_mode = #tpu.pipeline_mode<synchronous>, transform_indices = @transform_1, window_bounds = array<i64: 4, 16, 128>}, {pipeline_mode = #tpu.pipeline_mode<synchronous>, transform_indices = @transform_2, window_bounds = array<i64: 8, 4, 128>}, {pipeline_mode = #tpu.pipeline_mode<synchronous>, transform_indices = @transform_3, window_bounds = array<i64: 8, 16, 4>}]} {
    %c0 = arith.constant 0 : index
    %0 = memref.load %arg1[%c0] : memref<4xi32, #tpu.memory_space<smem>>
    %c0_i32 = arith.constant 0 : i32
    %c7_i32 = arith.constant 7 : i32
    %1 = arith.maxsi %c0_i32, %0 : i32
    %2 = arith.minsi %c7_i32, %1 : i32
    %3 = arith.index_cast %2 : i32 to index
    %c0_0 = arith.constant 0 : index
    %c0_1 = arith.constant 0 : index
    %4 = vector.load %arg2[%3, %c0_0, %c0_1] : memref<8x16x128xf32, #tpu.memory_space<vmem>>, vector<1x16x128xf32>
    %c0_2 = arith.constant 0 : index
    %c0_3 = arith.constant 0 : index
    %c0_4 = arith.constant 0 : index
    %5 = vector.load %arg3[%c0_2, %c0_3, %c0_4] : memref<4x16x128xf32, #tpu.memory_space<vmem>>, vector<1x16x128xf32>
    tpu.vector_store %arg3[%c0_2, %c0_3, %c0_4], %4 {strides = array<i32>} : memref<4x16x128xf32, #tpu.memory_space<vmem>>, vector<1x16x128xf32>,
    %c1 = arith.constant 1 : index
    %6 = memref.load %arg1[%c1] : memref<4xi32, #tpu.memory_space<smem>>
    %c0_i32_5 = arith.constant 0 : i32
    %c7_i32_6 = arith.constant 7 : i32
    %7 = arith.maxsi %c0_i32_5, %6 : i32
    %8 = arith.minsi %c7_i32_6, %7 : i32
    %9 = arith.index_cast %8 : i32 to index
    %c0_7 = arith.constant 0 : index
    %c0_8 = arith.constant 0 : index
    %10 = vector.load %arg2[%9, %c0_7, %c0_8] : memref<8x16x128xf32, #tpu.memory_space<vmem>>, vector<1x16x128xf32>
    %c1_9 = arith.constant 1 : index
    %c0_10 = arith.constant 0 : index
    %c0_11 = arith.constant 0 : index
    %11 = vector.load %arg3[%c1_9, %c0_10, %c0_11] : memref<4x16x128xf32, #tpu.memory_space<vmem>>, vector<1x16x128xf32>
    tpu.vector_store %arg3[%c1_9, %c0_10, %c0_11], %10 {strides = array<i32>} : memref<4x16x128xf32, #tpu.memory_space<vmem>>, vector<1x16x128xf32>,
    %c2 = arith.constant 2 : index
    %12 = memref.load %arg1[%c2] : memref<4xi32, #tpu.memory_space<smem>>
    %c0_i32_12 = arith.constant 0 : i32
    %c7_i32_13 = arith.constant 7 : i32
    %13 = arith.maxsi %c0_i32_12, %12 : i32
    %14 = arith.minsi %c7_i32_13, %13 : i32
    %15 = arith.index_cast %14 : i32 to index
    %c0_14 = arith.constant 0 : index
    %c0_15 = arith.constant 0 : index
    %16 = vector.load %arg2[%15, %c0_14, %c0_15] : memref<8x16x128xf32, #tpu.memory_space<vmem>>, vector<1x16x128xf32>
    %c2_16 = arith.constant 2 : index
    %c0_17 = arith.constant 0 : index
    %c0_18 = arith.constant 0 : index
    %17 = vector.load %arg3[%c2_16, %c0_17, %c0_18] : memref<4x16x128xf32, #tpu.memory_space<vmem>>, vector<1x16x128xf32>
    tpu.vector_store %arg3[%c2_16, %c0_17, %c0_18], %16 {strides = array<i32>} : memref<4x16x128xf32, #tpu.memory_space<vmem>>, vector<1x16x128xf32>,
    %c3 = arith.constant 3 : index
    %18 = memref.load %arg1[%c3] : memref<4xi32, #tpu.memory_space<smem>>
    %c0_i32_19 = arith.constant 0 : i32
    %c7_i32_20 = arith.constant 7 : i32
    %19 = arith.maxsi %c0_i32_19, %18 : i32
    %20 = arith.minsi %c7_i32_20, %19 : i32
    %21 = arith.index_cast %20 : i32 to index
    %c0_21 = arith.constant 0 : index
    %c0_22 = arith.constant 0 : index
    %22 = vector.load %arg2[%21, %c0_21, %c0_22] : memref<8x16x128xf32, #tpu.memory_space<vmem>>, vector<1x16x128xf32>
    %c3_23 = arith.constant 3 : index
    %c0_24 = arith.constant 0 : index
    %c0_25 = arith.constant 0 : index
    %23 = vector.load %arg3[%c3_23, %c0_24, %c0_25] : memref<4x16x128xf32, #tpu.memory_space<vmem>>, vector<1x16x128xf32>
    tpu.vector_store %arg3[%c3_23, %c0_24, %c0_25], %22 {strides = array<i32>} : memref<4x16x128xf32, #tpu.memory_space<vmem>>, vector<1x16x128xf32>,
    %c0_26 = arith.constant 0 : index
    %24 = memref.load %arg1[%c0_26] : memref<4xi32, #tpu.memory_space<smem>>
    %c0_i32_27 = arith.constant 0 : i32
    %c15_i32 = arith.constant 15 : i32
    %25 = arith.maxsi %c0_i32_27, %24 : i32
    %26 = arith.minsi %c15_i32, %25 : i32
    %c0_28 = arith.constant 0 : index
    %27 = arith.index_cast %26 : i32 to index
    %c0_29 = arith.constant 0 : index
    %28 = vector.load %arg2[%c0_28, %27, %c0_29] : memref<8x16x128xf32, #tpu.memory_space<vmem>>, vector<8x1x128xf32>
    %c0_30 = arith.constant 0 : index
    %c0_31 = arith.constant 0 : index
    %c0_32 = arith.constant 0 : index
    %29 = vector.load %arg4[%c0_30, %c0_31, %c0_32] : memref<8x4x128xf32, #tpu.memory_space<vmem>>, vector<8x1x128xf32>
    tpu.vector_store %arg4[%c0_30, %c0_31, %c0_32], %28 {strides = array<i32>} : memref<8x4x128xf32, #tpu.memory_space<vmem>>, vector<8x1x128xf32>,
    %c1_33 = arith.constant 1 : index
    %30 = memref.load %arg1[%c1_33] : memref<4xi32, #tpu.memory_space<smem>>
    %c0_i32_34 = arith.constant 0 : i32
    %c15_i32_35 = arith.constant 15 : i32
    %31 = arith.maxsi %c0_i32_34, %30 : i32
    %32 = arith.minsi %c15_i32_35, %31 : i32
    %c0_36 = arith.constant 0 : index
    %33 = arith.index_cast %32 : i32 to index
    %c0_37 = arith.constant 0 : index
    %34 = vector.load %arg2[%c0_36, %33, %c0_37] : memref<8x16x128xf32, #tpu.memory_space<vmem>>, vector<8x1x128xf32>
    %c0_38 = arith.constant 0 : index
    %c1_39 = arith.constant 1 : index
    %c0_40 = arith.constant 0 : index
    %35 = vector.load %arg4[%c0_38, %c1_39, %c0_40] : memref<8x4x128xf32, #tpu.memory_space<vmem>>, vector<8x1x128xf32>
    tpu.vector_store %arg4[%c0_38, %c1_39, %c0_40], %34 {strides = array<i32>} : memref<8x4x128xf32, #tpu.memory_space<vmem>>, vector<8x1x128xf32>,
    %c2_41 = arith.constant 2 : index
    %36 = memref.load %arg1[%c2_41] : memref<4xi32, #tpu.memory_space<smem>>
    %c0_i32_42 = arith.constant 0 : i32
    %c15_i32_43 = arith.constant 15 : i32
    %37 = arith.maxsi %c0_i32_42, %36 : i32
    %38 = arith.minsi %c15_i32_43, %37 : i32
    %c0_44 = arith.constant 0 : index
    %39 = arith.index_cast %38 : i32 to index
    %c0_45 = arith.constant 0 : index
    %40 = vector.load %arg2[%c0_44, %39, %c0_45] : memref<8x16x128xf32, #tpu.memory_space<vmem>>, vector<8x1x128xf32>
    %c0_46 = arith.constant 0 : index
    %c2_47 = arith.constant 2 : index
    %c0_48 = arith.constant 0 : index
    %41 = vector.load %arg4[%c0_46, %c2_47, %c0_48] : memref<8x4x128xf32, #tpu.memory_space<vmem>>, vector<8x1x128xf32>
    tpu.vector_store %arg4[%c0_46, %c2_47, %c0_48], %40 {strides = array<i32>} : memref<8x4x128xf32, #tpu.memory_space<vmem>>, vector<8x1x128xf32>,
    %c3_49 = arith.constant 3 : index
    %42 = memref.load %arg1[%c3_49] : memref<4xi32, #tpu.memory_space<smem>>
    %c0_i32_50 = arith.constant 0 : i32
    %c15_i32_51 = arith.constant 15 : i32
    %43 = arith.maxsi %c0_i32_50, %42 : i32
    %44 = arith.minsi %c15_i32_51, %43 : i32
    %c0_52 = arith.constant 0 : index
    %45 = arith.index_cast %44 : i32 to index
    %c0_53 = arith.constant 0 : index
    %46 = vector.load %arg2[%c0_52, %45, %c0_53] : memref<8x16x128xf32, #tpu.memory_space<vmem>>, vector<8x1x128xf32>
    %c0_54 = arith.constant 0 : index
    %c3_55 = arith.constant 3 : index
    %c0_56 = arith.constant 0 : index
    %47 = vector.load %arg4[%c0_54, %c3_55, %c0_56] : memref<8x4x128xf32, #tpu.memory_space<vmem>>, vector<8x1x128xf32>
    tpu.vector_store %arg4[%c0_54, %c3_55, %c0_56], %46 {strides = array<i32>} : memref<8x4x128xf32, #tpu.memory_space<vmem>>, vector<8x1x128xf32>,
    %48 = tpu.iota {dimensions = array<i32: 1>} : vector<1x4xi32>
    %c0_i32_57 = arith.constant 0 : i32
    %49 = vector.broadcast %c0_i32_57 : i32 to vector<1x4xi32>
    %c0_i32_58 = arith.constant 0 : i32
    %50 = vector.broadcast %c0_i32_58 : i32 to vector<1x4xi32>
    %51 = arith.cmpi eq, %48, %50 : vector<1x4xi32>
    %c0_59 = arith.constant 0 : index
    %52 = memref.load %arg1[%c0_59] : memref<4xi32, #tpu.memory_space<smem>>
    %53 = vector.broadcast %52 : i32 to vector<1x4xi32>
    %54 = arith.select %51, %53, %49 : vector<1x4xi1>, vector<1x4xi32>
    %c1_i32 = arith.constant 1 : i32
    %55 = vector.broadcast %c1_i32 : i32 to vector<1x4xi32>
    %56 = arith.cmpi eq, %48, %55 : vector<1x4xi32>
    %c1_60 = arith.constant 1 : index
    %57 = memref.load %arg1[%c1_60] : memref<4xi32, #tpu.memory_space<smem>>
    %58 = vector.broadcast %57 : i32 to vector<1x4xi32>
    %59 = arith.select %56, %58, %54 : vector<1x4xi1>, vector<1x4xi32>
    %c2_i32 = arith.constant 2 : i32
    %60 = vector.broadcast %c2_i32 : i32 to vector<1x4xi32>
    %61 = arith.cmpi eq, %48, %60 : vector<1x4xi32>
    %c2_61 = arith.constant 2 : index
    %62 = memref.load %arg1[%c2_61] : memref<4xi32, #tpu.memory_space<smem>>
    %63 = vector.broadcast %62 : i32 to vector<1x4xi32>
    %64 = arith.select %61, %63, %59 : vector<1x4xi1>, vector<1x4xi32>
    %c3_i32 = arith.constant 3 : i32
    %65 = vector.broadcast %c3_i32 : i32 to vector<1x4xi32>
    %66 = arith.cmpi eq, %48, %65 : vector<1x4xi32>
    %c3_62 = arith.constant 3 : index
    %67 = memref.load %arg1[%c3_62] : memref<4xi32, #tpu.memory_space<smem>>
    %68 = vector.broadcast %67 : i32 to vector<1x4xi32>
    %69 = arith.select %66, %68, %64 : vector<1x4xi1>, vector<1x4xi32>
    %70 = tpu.iota {dimensions = array<i32: 0>} : vector<128x4xi32>
    %71 = vector.broadcast %69 : vector<1x4xi32> to vector<128x4xi32>
    %72 = arith.cmpi eq, %70, %71 : vector<128x4xi32>
    %73 = arith.extui %72 : vector<128x4xi1> to vector<128x4xi32>
    %74 = arith.sitofp %73 : vector<128x4xi32> to vector<128x4xf32>
    %c0_63 = arith.constant 0 : index
    %c0_64 = arith.constant 0 : index
    %c0_65 = arith.constant 0 : index
    %75 = vector.load %arg2[%c0_63, %c0_64, %c0_65] : memref<8x16x128xf32, #tpu.memory_space<vmem>>, vector<8x16x128xf32>
    %76 = vector.shape_cast %75 : vector<8x16x128xf32> to vector<128x128xf32>
    %cst = arith.constant dense<0.000000e+00> : vector<128x4xf32>
    %77 = tpu.matmul %76, %74, %cst {dimension_numbers = #tpu.dot_dimension_numbers<[1], [0], [0], [1], [0, 0, 1, 1], [], []>} : vector<128x128xf32>, vector<128x4xf32>, vector<128x4xf32> -> vector<128x4xf32>
    %78 = vector.shape_cast %77 : vector<128x4xf32> to vector<8x16x4xf32>
    %c0_66 = arith.constant 0 : index
    %c0_67 = arith.constant 0 : index
    %c0_68 = arith.constant 0 : index
    %79 = vector.load %arg5[%c0_66, %c0_67, %c0_68] : memref<8x16x4xf32, #tpu.memory_space<vmem>>, vector<8x16x4xf32>
    tpu.vector_store %arg5[%c0_66, %c0_67, %c0_68], %78 {strides = array<i32>} : memref<8x16x4xf32, #tpu.memory_space<vmem>>, vector<8x16x4xf32>,
    return
  }
  func.func @transform_0(%arg0: i32, %arg1: memref<4xi32, #tpu.memory_space<smem>>) -> (i32, i32, i32) {
    %c0_i32 = arith.constant 0 : i32
    %c0_i32_0 = arith.constant 0 : i32
    %c0_i32_1 = arith.constant 0 : i32
    %c0_i32_2 = arith.constant 0 : i32
    return %c0_i32, %c0_i32_0, %c0_i32_1 : i32, i32, i32
  }
  func.func @transform_1(%arg0: i32, %arg1: memref<4xi32, #tpu.memory_space<smem>>) -> (i32, i32, i32) {
    %c0_i32 = arith.constant 0 : i32
    %c0_i32_0 = arith.constant 0 : i32
    %c0_i32_1 = arith.constant 0 : i32
    %c0_i32_2 = arith.constant 0 : i32
    return %c0_i32, %c0_i32_0, %c0_i32_1 : i32, i32, i32
  }
  func.func @transform_2(%arg0: i32, %arg1: memref<4xi32, #tpu.memory_space<smem>>) -> (i32, i32, i32) {
    %c0_i32 = arith.constant 0 : i32
    %c0_i32_0 = arith.constant 0 : i32
    %c0_i32_1 = arith.constant 0 : i32
    %c0_i32_2 = arith.constant 0 : i32
    return %c0_i32, %c0_i32_0, %c0_i32_1 : i32, i32, i32
  }
  func.func @transform_3(%arg0: i32, %arg1: memref<4xi32, #tpu.memory_space<smem>>) -> (i32, i32, i32) {
    %c0_i32 = arith.constant 0 : i32
    %c0_i32_0 = arith.constant 0 : i32
    %c0_i32_1 = arith.constant 0 : i32
    %c0_i32_2 = arith.constant 0 : i32
    return %c0_i32, %c0_i32_0, %c0_i32_1 : i32, i32, i32
  }
}

</mosaic_0001>

<bundles_post_ra>
// kernel: tpu_custom_call.1
= control target key start
LH: loop header
LB: loop body
LE: loop exit
PB: predicated region body
PF: predicated region fallthrough
CT: control target
= control target key end

     0   :  { %s1036_s0 = inlined_call_operand.hbm [shape: s32[4], index: 0, kind: input, shape index: {}]   ;;  %s1037_s1 = inlined_call_operand.hbm [shape: f32[8,16,128], index: 1, kind: input, shape index: {}]   ;;  %s1038_s2 = inlined_call_operand.hbm [shape: f32[4,16,128], index: 2, kind: output, shape index: {0}]   ;;  %s1039_s3 = inlined_call_operand.hbm [shape: f32[8,4,128], index: 3, kind: output, shape index: {1}]   ;;  %s1040_s4 = inlined_call_operand.vmem [shape: f32[8,16,4], index: 4, kind: output, shape index: {2}]  }
   0x1   :  { %s723_s17 = scalar_lea.hbm %s1036_s0, 16 }
   0x2   :  { %p724_p0 = scmp.ne.s32.totalorder %s1036_s0, %s723_s17  ;;  %p727_p1 = scmp.lt.u32.totalorder %s723_s17, %s1036_s0 }
   0x4   :  { %p729_p2 = pnand %p727_p1, %p724_p0 }
   0x6   :  { %732 = shalt.err (!%p729_p2)  }
   0x7   :  { %s807_s22 = smov [#allocation3]  }
   0x8   :  { %11 = dma.hbm_to_smem %s1036_s0, 16, %s807_s22, [#allocation2] }
   0x9   :  { %799 = dma.done.wait [#allocation2], 16 }
   0xa   :  { %800 = vsyncadd [#allocation2], 4294967280 }
   0xb   :  { %13 = sfence }
   0xc   :  { %14 = vsyncpa [#allocation5], 0 }
   0xd   :  { %15 = vsyncpa [#allocation6], 0 }
   0xe   :  { %16 = vsyncpa [#allocation9], 0  ;;  %s808_s25 = smov [#allocation4]   ;;  %s733_s29 = scalar_lea.hbm %s1037_s1, 2048 }
   0xf   :  { %s22_s26 = sshll.u32 %s808_s25, 4  ;;  %p734_p3 = scmp.ne.s32.totalorder %s1037_s1, %s733_s29  ;;  %s23_s26 = int_to_ptr.vmem [resolvable:$true] %s22_s26 }
  0x10   :  { %p737_p4 = scmp.lt.u32.totalorder %s733_s29, %s1037_s1 }
  0x12   :  { %p739_p5 = pnand %p737_p4, %p734_p3 }
  0x14   :  { %742 = shalt.err (!%p739_p5)
}
  0x15   :  { %s743_s0 = scalar_lea.vmem %s23_s26, 2048  ;;  %p748_p7 = scmp.lt.s32.totalorder %s23_s26, %s23_s26 }
  0x16   :  { %p744_p6 = scmp.ne.s32.totalorder %s23_s26, %s743_s0  ;;  %p749_p8 = scmp.lt.s32.totalorder %s743_s0, %s743_s0 }
  0x18   :  { %p750_p9 = por %p749_p8, %p748_p7 }
  0x1a   :  { %p751_p10 = pnand %p750_p9, %p744_p6 }
  0x1c   :  { %754 = shalt.err (!%p751_p10)
}
  0x1d   :  { %s809_s8 = smov 128   ;;  %s810_s9 = smov 8  }
  0x1e   :  { %28 = dma.hbm_to_vmem [thread:$0]  %s1037_s1, 2048, %s23_s26, [#allocation5], %s809_s8, %s809_s8, %s810_s9  }
  0x1f   :  { %801 = dma.done.wait [#allocation5], 2048  }
  0x20   :  { %802 = vsyncadd [#allocation5], 4294965248  ;;  %v167_v0 = vlaneseq  ;;  %s868_s12 = sld [smem:[#allocation3]]  ;;  %s870_s13 = sld [smem:[#allocation3 + $0x1]]  ;;  %v250_v7 = vld [vmem:[#allocation4] sm:$0xff]  ;;  %v251_v29 = vld [vmem:[#allocation4 + $0x8] sm:$0xff] }
  0x21   :  { %s872_s14 = sld [smem:[#allocation3 + $0x2]]  ;;  %s874_s15 = sld [smem:[#allocation3 + $0x3]]  ;;  %v258_v8 = vld [vmem:[#allocation4 + $0x40] sm:$0xff]  ;;  %642 = vmatprep.mubr.f32.mxu0 %v250_v7  ;;  %v811_v18 = vmov 1.0|1.0   ;;  %v259_v30 = vld [vmem:[#allocation4 + $0x48] sm:$0xff] }
  0x22   :  { %v168_v1 = vand.u32 127, %v167_v0  ;;  %v876_v2 = vshrl.u32 %v167_v0, 7  ;;  %654 = vmatprep.mubr.f32.mxu1 %v258_v8  ;;  %v252_v31 = vld [vmem:[#allocation4 + $0x10] sm:$0xff]  ;;  %v253_v33 = vld [vmem:[#allocation4 + $0x18] sm:$0xff]  ;;  %v254_v35 = vld [vmem:[#allocation4 + $0x20] sm:$0xff]  ;;  %s812_s30 = smov [#allocation7]  }
  0x23   :  { %v260_v32 = vld [vmem:[#allocation4 + $0x50] sm:$0xff]  ;;  %v261_v34 = vld [vmem:[#allocation4 + $0x58] sm:$0xff]  ;;  %v262_v36 = vld [vmem:[#allocation4 + $0x60] sm:$0xff]  ;;  %s433_s5 = sshll.u32 %s812_s30, 4  ;;  %s434_s5 = int_to_ptr.vmem [resolvable:$true] %s433_s5 }
  0x24   :  { %vm169_vm0 = vcmp.eq.s32.totalorder %v168_v1, 0  ;;  %vm173_vm1 = vcmp.eq.s32.totalorder %v168_v1, 1  ;;  %vm177_vm2 = vcmp.eq.s32.totalorder %v168_v1, 2  ;;  %vm181_vm3 = vcmp.eq.s32.totalorder %v168_v1, 3  ;;  %v255_v37 = vld [vmem:[#allocation4 + $0x28] sm:$0xff]  ;;  %v256_v39 = vld [vmem:[#allocation4 + $0x30] sm:$0xff]  ;;  %p760_p9 = scmp.lt.s32.totalorder %s434_s5, %s434_s5 }
  0x25   :  { %v187_v5 = vadd.s32 8, %v876_v2  ;;  %v188_v6 = vadd.s32 16, %v876_v2  ;;  %v189_v12 = vadd.s32 24, %v876_v2  ;;  %v190_v15 = vadd.s32 32, %v876_v2  ;;  %v263_v38 = vld [vmem:[#allocation4 + $0x68] sm:$0xff]  ;;  %v264_v40 = vld [vmem:[#allocation4 + $0x70] sm:$0xff] }
  0x26   :  { %v171_v3 = vstv %s868_s12  ;;  %v175_v4 = vstv %s870_s13  ;;  %v191_v16 = vadd.s32 40, %v876_v2  ;;  %v192_v19 = vadd.s32 48, %v876_v2  ;;  %v257_v41 = vld [vmem:[#allocation4 + $0x38] sm:$0xff]  ;;  %p33_p11 = scmp.gt.s32.totalorder %s868_s12, 0  ;;  %p44_p12 = scmp.gt.s32.totalorder %s870_s13, 0 }
  0x27   :  { %v172_v9 = vsel %vm169_vm0, %v171_v3, 0  ;;  %v179_v10 = vstv %s872_s14  ;;  %v183_v11 = vstv %s874_s15  ;;  %v193_v20 = vadd.s32 56, %v876_v2  ;;  %v265_v42 = vld [vmem:[#allocation4 + $0x78] sm:$0xff]  ;;  %p56_p13 = scmp.gt.s32.totalorder %s872_s14, 0  ;;  %p68_p0 = scmp.gt.s32.totalorder %s874_s15, 0 }
  0x28   :  { %v176_v13 = vsel %vm173_vm1, %v175_v4, %v172_v9  ;;  %v194_v21 = vadd.s32 64, %v876_v2  ;;  %v195_v22 = vadd.s32 72, %v876_v2  ;;  %v196_v23 = vadd.s32 80, %v876_v2  ;;  %s904_s1 = scalar_select %p33_p11, %s868_s12, 0 }
  0x29   :  { %v180_v14 = vsel %vm177_vm2, %v179_v10, %v176_v13  ;;  %v197_v24 = vadd.s32 88, %v876_v2  ;;  %v198_v25 = vadd.s32 96, %v876_v2  ;;  %v199_v26 = vadd.s32 104, %v876_v2  ;;  %p477_p1 = scmp.lt.s32.totalorder %s868_s12, 7  ;;  %p484_p2 = scmp.lt.s32.totalorder %s870_s13, 7 }
  0x2a   :  { %v184_v17 = vsel %vm181_vm3, %v183_v11, %v180_v14  ;;  %v200_v27 = vadd.s32 112, %v876_v2  ;;  %v201_v28 = vadd.s32 120, %v876_v2  ;;  %s909_s16 = scalar_select %p44_p12, %s870_s13, 0 }
  0x2b   :  { %vm202_vm4 = vcmp.eq.s32.totalorder %v876_v2, %v184_v17  ;;  %vm203_vm5 = vcmp.eq.s32.totalorder %v187_v5, %v184_v17  ;;  %vm204_vm6 = vcmp.eq.s32.totalorder %v188_v6, %v184_v17  ;;  %vm205_vm7 = vcmp.eq.s32.totalorder %v189_v12, %v184_v17  ;;  %s563_s17 = scalar_select %p477_p1, %s904_s1, 7 }
  0x2c   :  { %vm666_vm8 = vmpackc.low %vm203_vm5, %vm202_vm4  ;;  %vm206_vm10 = vcmp.eq.s32.totalorder %v190_v15, %v184_v17  ;;  %vm207_vm11 = vcmp.eq.s32.totalorder %v191_v16, %v184_v17  ;;  %vm208_vm13 = vcmp.eq.s32.totalorder %v192_v19, %v184_v17  ;;  %vm209_vm14 = vcmp.eq.s32.totalorder %v193_v20, %v184_v17  ;;  %s565_s18 = scalar_select %p484_p2, %s909_s16, 7 }
  0x2d   :  { %667 = vmatprep.subr.msk.bf16.mxu0 %vm666_vm8, %v811_v18  ;;  %698 = vmatprep.subr.msk.bf16.mxu1 %vm666_vm8, %v811_v18  ;;  %vm670_vm9 = vmpackc.low %vm205_vm7, %vm204_vm6  ;;  %vm210_vm0 = vcmp.eq.s32.totalorder %v194_v21, %v184_v17  ;;  %vm211_vm1 = vcmp.eq.s32.totalorder %v195_v22, %v184_v17  ;;  %vm212_vm3 = vcmp.eq.s32.totalorder %v196_v23, %v184_v17  ;;  %s482_s19 = sshll.u32 %s563_s17, 4  ;;  %p491_p3 = scmp.lt.s32.totalorder %s872_s14, 7 }
  0x2e   :  { %669 = vmatpush3.bf16.msk.msra.mxu0 %vm666_vm8, %v811_v18  ;;  %706 = vmatpush3.bf16.msk.msra.mxu1 %vm666_vm8, %v811_v18  ;;  %vm674_vm12 = vmpackc.low %vm207_vm11, %vm206_vm10  ;;  %vm213_vm4 = vcmp.eq.s32.totalorder %v197_v24, %v184_v17  ;;  %vm214_vm6 = vcmp.eq.s32.totalorder %v198_v25, %v184_v17  ;;  %vm215_vm7 = vcmp.eq.s32.totalorder %v199_v26, %v184_v17  ;;  %s489_s20 = sshll.u32 %s565_s18, 4  ;;  %s38_s21 = scalar_lea.vmem [#allocation4], %s482_s19 }
  0x2f   :  { %671 = vmatprep.subr.msk.bf16.mxu0 %vm670_vm9, %v811_v18  ;;  %699 = vmatprep.subr.msk.bf16.mxu1 %vm670_vm9, %v811_v18  ;;  %vm678_vm15 = vmpackc.low %vm209_vm14, %vm208_vm13  ;;  %vm217_vm10 = vcmp.eq.s32.totalorder %v201_v28, %v184_v17  ;;  %v39_v43 = vld [vmem:[%s38_s21] sm:$0xff]  ;;  %v40_v44 = vld [vmem:[%s38_s21 + $0x8] sm:$0xff]  ;;  %p498_p4 = scmp.lt.s32.totalorder %s874_s15, 7  ;;  %s49_s22 = scalar_lea.vmem [#allocation4], %s489_s20 }
  0x30   :  { %vm682_vm2 = vmpackc.low %vm211_vm1, %vm210_vm0  ;;  %41 = vst [vmem:[#allocation7] sm:$0xff] %v39_v43  ;;  %v50_v45 = vld [vmem:[%s49_s22] sm:$0xff]  ;;  %v51_v46 = vld [vmem:[%s49_s22 + $0x8] sm:$0xff]  ;;  %s918_s23 = scalar_select %p56_p13, %s872_s14, 0 }
  0x31   :  { %vm686_vm5 = vmpackc.low %vm213_vm4, %vm212_vm3  ;;  %42 = vst [vmem:[#allocation7 + $0x8] sm:$0xff] %v40_v44  ;;  %s923_s24 = scalar_select %p68_p0, %s874_s15, 0 }
  0x32   :  { %673 = vmatpush3.bf16.msk.msra.mxu0 %vm670_vm9, %v811_v18  ;;  %707 = vmatpush3.bf16.msk.msra.mxu1 %vm670_vm9, %v811_v18  ;;  %vm690_vm8 = vmpackc.low %vm215_vm7, %vm214_vm6  ;;  %vm216_vm9 = vcmp.eq.s32.totalorder %v200_v27, %v184_v17  ;;  %53 = vst [vmem:[#allocation7 + $0x10] sm:$0xff] %v50_v45  ;;  %s567_s25 = scalar_select %p491_p3, %s918_s23, 7 }
  0x33   :  { %675 = vmatprep.subr.msk.bf16.mxu0 %vm674_vm12, %v811_v18  ;;  %700 = vmatprep.subr.msk.bf16.mxu1 %vm674_vm12, %v811_v18  ;;  %vm694_vm11 = vmpackc.low %vm217_vm10, %vm216_vm9  ;;  %54 = vst [vmem:[#allocation7 + $0x18] sm:$0xff] %v51_v46  ;;  %s569_s26 = scalar_select %p498_p4, %s923_s24, 7 }
  0x34   :  { %s496_s27 = sshll.u32 %s567_s25, 4  ;;  %p504_p5 = scmp.lt.s32.totalorder %s868_s12, 15 }
  0x35   :  { %s503_s28 = sshll.u32 %s569_s26, 4  ;;  %s61_s29 = scalar_lea.vmem [#allocation4], %s496_s27 }
  0x36   :  { %677 = vmatpush3.bf16.msk.msra.mxu0 %vm674_vm12, %v811_v18  ;;  %708 = vmatpush3.bf16.msk.msra.mxu1 %vm674_vm12, %v811_v18  ;;  %v62_v47 = vld [vmem:[%s61_s29] sm:$0xff]  ;;  %v63_v48 = vld [vmem:[%s61_s29 + $0x8] sm:$0xff]  ;;  %s73_s6 = scalar_lea.vmem [#allocation4], %s503_s28  ;;  %p510_p6 = scmp.lt.s32.totalorder %s870_s13, 15 }
  0x37   :  { %679 = vmatprep.subr.msk.bf16.mxu0 %vm678_vm15, %v811_v18  ;;  %701 = vmatprep.subr.msk.bf16.mxu1 %vm678_vm15, %v811_v18  ;;  %65 = vst [vmem:[#allocation7 + $0x20] sm:$0xff] %v62_v47  ;;  %66 = vst [vmem:[#allocation7 + $0x28] sm:$0xff] %v63_v48  ;;  %v74_v49 = vld [vmem:[%s73_s6] sm:$0xff]  ;;  %v75_v50 = vld [vmem:[%s73_s6 + $0x8] sm:$0xff]  ;;  %p516_p7 = scmp.lt.s32.totalorder %s872_s14, 15  ;;  %s755_s7 = scalar_lea.vmem %s434_s5, 1024 }
  0x38   :  { %77 = vst [vmem:[#allocation7 + $0x30] sm:$0xff] %v74_v49  ;;  %78 = vst [vmem:[#allocation7 + $0x38] sm:$0xff] %v75_v50  ;;  %p756_p8 = scmp.ne.s32.totalorder %s434_s5, %s755_s7  ;;  %p761_p10 = scmp.lt.s32.totalorder %s755_s7, %s755_s7 }
  0x3a   :  { %681 = vmatpush3.bf16.msk.msra.mxu0 %vm678_vm15, %v811_v18  ;;  %709 = vmatpush3.bf16.msk.msra.mxu1 %vm678_vm15, %v811_v18  ;;  %p762_p11 = por %p761_p10, %p760_p9 }
  0x3b   :  { %683 = vmatprep.subr.msk.bf16.mxu0 %vm682_vm2, %v811_v18  ;;  %702 = vmatprep.subr.msk.bf16.mxu1 %vm682_vm2, %v811_v18 }
  0x3c   :  { %p763_p12 = pnand %p762_p11, %p756_p8 }
  0x3e   :  { %685 = vmatpush3.bf16.msk.msra.mxu0 %vm682_vm2, %v811_v18  ;;  %710 = vmatpush3.bf16.msk.msra.mxu1 %vm682_vm2, %v811_v18 }
  0x3f   :  { %687 = vmatprep.subr.msk.bf16.mxu0 %vm686_vm5, %v811_v18  ;;  %703 = vmatprep.subr.msk.bf16.mxu1 %vm686_vm5, %v811_v18 }
  0x42   :  { %689 = vmatpush3.bf16.msk.msra.mxu0 %vm686_vm5, %v811_v18  ;;  %711 = vmatpush3.bf16.msk.msra.mxu1 %vm686_vm5, %v811_v18 }
  0x43   :  { %691 = vmatprep.subr.msk.bf16.mxu0 %vm690_vm8, %v811_v18  ;;  %704 = vmatprep.subr.msk.bf16.mxu1 %vm690_vm8, %v811_v18 }
  0x46   :  { %693 = vmatpush3.bf16.msk.msra.mxu0 %vm690_vm8, %v811_v18  ;;  %712 = vmatpush3.bf16.msk.msra.mxu1 %vm690_vm8, %v811_v18 }
  0x47   :  { %695 = vmatprep.subr.msk.bf16.mxu0 %vm694_vm11, %v811_v18  ;;  %705 = vmatprep.subr.msk.bf16.mxu1 %vm694_vm11, %v811_v18 }
  0x4a   :  { %697 = vmatpush3.bf16.msk.msra.mxu0 %vm694_vm11, %v811_v18  ;;  %713 = vmatpush3.bf16.msk.msra.mxu1 %vm694_vm11, %v811_v18 }
  0x4d   :  { %643 = vmatmul.mubr.f32.vlgmr.msra.gmra.mrb[0].mxu0 %v251_v29  ;;  %655 = vmatmul.mubr.f32.vlgmr.msra.gmra.mrb[0].mxu1 %v259_v30 }
  0x4e   :  { %645 = vmatprep.mubr.f32.mxu0 %v252_v31  ;;  %657 = vmatprep.mubr.f32.mxu1 %v260_v32 }
  0x51   :  { %646 = vmatmul.mubr.f32.gmra.mrb[2].mxu0 %v253_v33  ;;  %658 = vmatmul.mubr.f32.gmra.mrb[2].mxu1 %v261_v34 }
  0x52   :  { %648 = vmatprep.mubr.f32.mxu0 %v254_v35  ;;  %660 = vmatprep.mubr.f32.mxu1 %v262_v36 }
  0x55   :  { %649 = vmatmul.mubr.f32.gmra.mrb[4].mxu0 %v255_v37  ;;  %661 = vmatmul.mubr.f32.gmra.mrb[4].mxu1 %v263_v38 }
  0x56   :  { %651 = vmatprep.mubr.f32.mxu0 %v256_v39  ;;  %663 = vmatprep.mubr.f32.mxu1 %v264_v40 }
  0x59   :  { %652 = vmatmul.mubr.f32.gmra.mrb[6].mxu0 %v257_v41  ;;  %664 = vmatmul.mubr.f32.gmra.mrb[6].mxu1 %v265_v42 }
  0x5a   :  { %766 = shalt.err (!%p763_p12)
}
  0x5b   :  { %s767_s11 = scalar_lea.hbm %s1038_s2, 1024 }
  0x5c   :  { %p768_p13 = scmp.ne.s32.totalorder %s1038_s2, %s767_s11  ;;  %p771_p0 = scmp.lt.u32.totalorder %s767_s11, %s1038_s2 }
  0x5e   :  { %p773_p1 = pnand %p771_p0, %p768_p13 }
  0x60   :  { %776 = shalt.err (!%p773_p1)
}
  0x61   :  { %439 = dma.vmem_to_hbm [thread:$0]  %s434_s5, 1024, %s1038_s2, [#allocation6], %s809_s8, %s809_s8, %s810_s9  }
  0x62   :  { %s1042_s1 = smov (!%p504_p5, %s904_s1), 15  ;;  %s1044_s16 = smov (!%p510_p6, %s909_s16), 15 }
  0x63   :  { %p522_p2 = scmp.lt.s32.totalorder %s874_s15, 15  ;;  %s84_s25 = scalar_lea.vmem [#allocation4], %s1042_s1 }
  0x64   :  { %v85_v51 = vld [vmem:[%s84_s25] sm:$0x1]  ;;  %v86_v52 = vld [vmem:[%s84_s25 + $0x10] sm:$0x1]  ;;  %s106_s2 = scalar_lea.vmem [#allocation4], %s1044_s16  ;;  %s1046_s23 = smov (!%p516_p7, %s918_s23), 15 }
  0x65   :  { %v87_v53 = vld [vmem:[%s84_s25 + $0x20] sm:$0x1]  ;;  %v88_v54 = vld [vmem:[%s84_s25 + $0x30] sm:$0x1]  ;;  %93 = vst [vmem:[#allocation8] sm:$0x1] %v85_v51 }
  0x66   :  { %v89_v55 = vld [vmem:[%s84_s25 + $0x40] sm:$0x1]  ;;  %v90_v56 = vld [vmem:[%s84_s25 + $0x50] sm:$0x1]  ;;  %94 = vst [vmem:[#allocation8 + $0x4] sm:$0x1] %v86_v52 }
  0x67   :  { %95 = vst [vmem:[#allocation8 + $0x8] sm:$0x1] %v87_v53  ;;  %v91_v57 = vld [vmem:[%s84_s25 + $0x60] sm:$0x1]  ;;  %v92_v58 = vld [vmem:[%s84_s25 + $0x70] sm:$0x1] }
  0x68   :  { %96 = vst [vmem:[#allocation8 + $0xc] sm:$0x1] %v88_v54  ;;  %97 = vst [vmem:[#allocation8 + $0x10] sm:$0x1] %v89_v55  ;;  %v107_v59 = vld [vmem:[%s106_s2] sm:$0x1] }
  0x69   :  { %98 = vst [vmem:[#allocation8 + $0x14] sm:$0x1] %v90_v56  ;;  %99 = vst [vmem:[#allocation8 + $0x18] sm:$0x1] %v91_v57  ;;  %v108_v60 = vld [vmem:[%s106_s2 + $0x10] sm:$0x1] }
  0x6a   :  { %100 = vst [vmem:[#allocation8 + $0x1c] sm:$0x1] %v92_v58  ;;  %v109_v61 = vld [vmem:[%s106_s2 + $0x20] sm:$0x1]  ;;  %v110_v62 = vld [vmem:[%s106_s2 + $0x30] sm:$0x1] }
  0x6b   :  { %v111_v63 = vld [vmem:[%s106_s2 + $0x40] sm:$0x1]  ;;  %v112_v0 = vld [vmem:[%s106_s2 + $0x50] sm:$0x1]  ;;  %115 = vst [vmem:[#allocation8 + $0x1] sm:$0x1] %v107_v59 }
  0x6c   :  { %116 = vst [vmem:[#allocation8 + $0x5] sm:$0x1] %v108_v60  ;;  %117 = vst [vmem:[#allocation8 + $0x9] sm:$0x1] %v109_v61  ;;  %v113_v1 = vld [vmem:[%s106_s2 + $0x60] sm:$0x1] }
  0x6d   :  { %v114_v2 = vld [vmem:[%s106_s2 + $0x70] sm:$0x1]  ;;  %118 = vst [vmem:[#allocation8 + $0xd] sm:$0x1] %v110_v62  ;;  %119 = vst [vmem:[#allocation8 + $0x11] sm:$0x1] %v111_v63 }
  0x6e   :  { %120 = vst [vmem:[#allocation8 + $0x15] sm:$0x1] %v112_v0  ;;  %121 = vst [vmem:[#allocation8 + $0x19] sm:$0x1] %v113_v1  ;;  %s1048_s24 = smov (!%p522_p2, %s923_s24), 15  ;;  %s813_s8 = smov [#allocation8]  }
  0x6f   :  { %122 = vst [vmem:[#allocation8 + $0x1d] sm:$0x1] %v114_v2  ;;  %s445_s9 = sshll.u32 %s813_s8, 4  ;;  %s128_s12 = scalar_lea.vmem [#allocation4], %s1046_s23  ;;  %s446_s9 = int_to_ptr.vmem [resolvable:$true] %s445_s9 }
  0x70   :  { %v129_v3 = vld [vmem:[%s128_s12] sm:$0x1]  ;;  %v130_v4 = vld [vmem:[%s128_s12 + $0x10] sm:$0x1]  ;;  %s150_s13 = scalar_lea.vmem [#allocation4], %s1048_s24  ;;  %s777_s14 = scalar_lea.vmem %s446_s9, 512 }
  0x71   :  { %v131_v5 = vld [vmem:[%s128_s12 + $0x20] sm:$0x1]  ;;  %v132_v6 = vld [vmem:[%s128_s12 + $0x30] sm:$0x1]  ;;  %137 = vst [vmem:[#allocation8 + $0x2] sm:$0x1] %v129_v3  ;;  %p778_p3 = scmp.ne.s32.totalorder %s446_s9, %s777_s14  ;;  %p782_p4 = scmp.lt.s32.totalorder %s446_s9, %s446_s9 }
  0x72   :  { %v133_v7 = vld [vmem:[%s128_s12 + $0x40] sm:$0x1]  ;;  %v134_v8 = vld [vmem:[%s128_s12 + $0x50] sm:$0x1]  ;;  %138 = vst [vmem:[#allocation8 + $0x6] sm:$0x1] %v130_v4  ;;  %p783_p5 = scmp.lt.s32.totalorder %s777_s14, %s777_s14 }
  0x73   :  { %139 = vst [vmem:[#allocation8 + $0xa] sm:$0x1] %v131_v5  ;;  %v135_v9 = vld [vmem:[%s128_s12 + $0x60] sm:$0x1]  ;;  %v136_v10 = vld [vmem:[%s128_s12 + $0x70] sm:$0x1] }
  0x74   :  { %140 = vst [vmem:[#allocation8 + $0xe] sm:$0x1] %v132_v6  ;;  %141 = vst [vmem:[#allocation8 + $0x12] sm:$0x1] %v133_v7  ;;  %v151_v11 = vld [vmem:[%s150_s13] sm:$0x1]  ;;  %p784_p6 = por %p783_p5, %p782_p4 }
  0x75   :  { %142 = vst [vmem:[#allocation8 + $0x16] sm:$0x1] %v134_v8  ;;  %143 = vst [vmem:[#allocation8 + $0x1a] sm:$0x1] %v135_v9  ;;  %v152_v12 = vld [vmem:[%s150_s13 + $0x10] sm:$0x1] }
  0x76   :  { %144 = vst [vmem:[#allocation8 + $0x1e] sm:$0x1] %v136_v10  ;;  %v153_v13 = vld [vmem:[%s150_s13 + $0x20] sm:$0x1]  ;;  %v154_v14 = vld [vmem:[%s150_s13 + $0x30] sm:$0x1]  ;;  %p785_p7 = pnand %p784_p6, %p778_p3 }
  0x77   :  { %v155_v15 = vld [vmem:[%s150_s13 + $0x40] sm:$0x1]  ;;  %v156_v16 = vld [vmem:[%s150_s13 + $0x50] sm:$0x1]  ;;  %159 = vst [vmem:[#allocation8 + $0x3] sm:$0x1] %v151_v11 }
  0x78   :  { %160 = vst [vmem:[#allocation8 + $0x7] sm:$0x1] %v152_v12  ;;  %161 = vst [vmem:[#allocation8 + $0xb] sm:$0x1] %v153_v13  ;;  %v157_v17 = vld [vmem:[%s150_s13 + $0x60] sm:$0x1] }
  0x79   :  { %v158_v18 = vld [vmem:[%s150_s13 + $0x70] sm:$0x1]  ;;  %162 = vst [vmem:[#allocation8 + $0xf] sm:$0x1] %v154_v14  ;;  %163 = vst [vmem:[#allocation8 + $0x13] sm:$0x1] %v155_v15 }
  0x7a   :  { %164 = vst [vmem:[#allocation8 + $0x17] sm:$0x1] %v156_v16  ;;  %165 = vst [vmem:[#allocation8 + $0x1b] sm:$0x1] %v157_v17 }
  0x7b   :  { %166 = vst [vmem:[#allocation8 + $0x1f] sm:$0x1] %v158_v18 }
  0x7c   :  { %788 = shalt.err (!%p785_p7)
}
  0x7d   :  { %s789_s16 = scalar_lea.hbm %s1039_s3, 512 }
  0x7e   :  { %p790_p8 = scmp.ne.s32.totalorder %s1039_s3, %s789_s16  ;;  %p793_p9 = scmp.lt.u32.totalorder %s789_s16, %s1039_s3 }
  0x80   :  { %p795_p10 = pnand %p793_p9, %p790_p8 }
  0x82   :  { %798 = shalt.err (!%p795_p10)
}
  0x83   :  { %s814_s28 = smov 64   ;;  %s815_s29 = smov 4   ;;  %vm411_vm12 = vcmask 31744  }
  0x84   :  { %451 = dma.vmem_to_hbm [thread:$0]  %s446_s9, 512, %s1039_s3, [#allocation9], %s814_s28, %s814_s28, %s815_s29  }
 0x120   :  { %v644_v19 = vpop.f32.mrb[0].mxu0  ;;  %v656_v20 = vpop.f32.mrb[0].mxu1 }
 0x121   :  { %413 = vst.msk [vmem:[%s1040_s4 + $0x8] sm:$0xff] %vm411_vm12, %v644_v19  ;;  %421 = vst.msk [vmem:[%s1040_s4 + $0x48] sm:$0xff] %vm411_vm12, %v656_v20  ;;  %v332_v21 = vpop.f32.mrb[1].mxu0  ;;  %v372_v22 = vpop.f32.mrb[1].mxu1 }
 0x122   :  { %412 = vst.msk [vmem:[%s1040_s4] sm:$0xff] %vm411_vm12, %v332_v21  ;;  %420 = vst.msk [vmem:[%s1040_s4 + $0x40] sm:$0xff] %vm411_vm12, %v372_v22 }
 0x124   :  { %v647_v23 = vpop.f32.mrb[2].mxu0  ;;  %v659_v24 = vpop.f32.mrb[2].mxu1 }
 0x125   :  { %415 = vst.msk [vmem:[%s1040_s4 + $0x18] sm:$0xff] %vm411_vm12, %v647_v23  ;;  %423 = vst.msk [vmem:[%s1040_s4 + $0x58] sm:$0xff] %vm411_vm12, %v659_v24  ;;  %v342_v25 = vpop.f32.mrb[3].mxu0  ;;  %v382_v26 = vpop.f32.mrb[3].mxu1 }
 0x126   :  { %414 = vst.msk [vmem:[%s1040_s4 + $0x10] sm:$0xff] %vm411_vm12, %v342_v25  ;;  %422 = vst.msk [vmem:[%s1040_s4 + $0x50] sm:$0xff] %vm411_vm12, %v382_v26 }
 0x128   :  { %v650_v27 = vpop.f32.mrb[4].mxu0  ;;  %v662_v28 = vpop.f32.mrb[4].mxu1 }
 0x129   :  { %417 = vst.msk [vmem:[%s1040_s4 + $0x28] sm:$0xff] %vm411_vm12, %v650_v27  ;;  %425 = vst.msk [vmem:[%s1040_s4 + $0x68] sm:$0xff] %vm411_vm12, %v662_v28  ;;  %v352_v29 = vpop.f32.mrb[5].mxu0  ;;  %v392_v30 = vpop.f32.mrb[5].mxu1 }
 0x12a   :  { %416 = vst.msk [vmem:[%s1040_s4 + $0x20] sm:$0xff] %vm411_vm12, %v352_v29  ;;  %424 = vst.msk [vmem:[%s1040_s4 + $0x60] sm:$0xff] %vm411_vm12, %v392_v30 }
 0x12c   :  { %v653_v31 = vpop.f32.mrb[6].mxu0  ;;  %v665_v32 = vpop.f32.mrb[6].mxu1 }
 0x12d   :  { %419 = vst.msk [vmem:[%s1040_s4 + $0x38] sm:$0xff] %vm411_vm12, %v653_v31  ;;  %427 = vst.msk [vmem:[%s1040_s4 + $0x78] sm:$0xff] %vm411_vm12, %v665_v32  ;;  %v362_v33 = vpop.f32.mrb[7].mxu0  ;;  %v402_v34 = vpop.f32.mrb[7].mxu1 }
 0x12e   :  { %418 = vst.msk [vmem:[%s1040_s4 + $0x30] sm:$0xff] %vm411_vm12, %v362_v33  ;;  %426 = vst.msk [vmem:[%s1040_s4 + $0x70] sm:$0xff] %vm411_vm12, %v402_v34 }
 0x12f   :  { %803 = dma.done.wait [#allocation6], 1024  }
 0x130   :  { %804 = vsyncadd [#allocation6], 4294966272 }
 0x131   :  { %805 = dma.done.wait [#allocation9], 512  }
 0x132   :  { %806 = vsyncadd [#allocation9], 4294966784 }
 0x133   :  { %462 = vsyncpa [#allocation5], 1 }
 0x134   :  { %463 = vsyncpa [#allocation6], 1 }
 0x135   :  { %464 = vsyncpa [#allocation9], 1 }

</bundles_post_ra>
